<compile_context>
chip_gen: v7x
topology: tpu7x:2x2x1
jax: 0.10.0
libtpu: 0.0.40
codegen_flags: <defaults>
</compile_context>

<pallas_src>
import numpy as np
import jax
import jax.numpy as jnp
from jax.experimental import pallas as pl
from jax.experimental.pallas import tpu as pltpu


def _largest_divisor_leq(n, cap):
    cap = max(1, min(cap, n))
    for d in range(cap, 0, -1):
        if n % d == 0:
            return d
    return 1


def conv_block_forward(x_nchw, w_hwio, b, *, ksize=4, stride=1, dil=1):
    """Pallas implementation of ConvBlock.forward for the Conv2d / ReLU /
    no-norm configuration (the module's defaults)."""
    assert stride == 1 and dil == 1, "only the default stride/dilation path"
    # TODO(synk): ConvTranspose2d / BatchNorm / InstanceNorm / leaky / tanh
    # branches of ConvBlock are not exercised by the default config.

    N, Cin, H, W = x_nchw.shape
    K = ksize
    Cout = w_hwio.shape[-1]

    # Same 'pad=same' arithmetic as the PyTorch forward (k=4,s=1,d=1 → (1,2)).
    desired_h = H // stride
    desired_w = W // stride
    pady = 0.5 * (stride * (desired_h - 1) + (K - 1) * (dil - 1) + K - H)
    padx = 0.5 * (stride * (desired_w - 1) + (K - 1) * (dil - 1) + K - W)
    pt, pb = int(np.floor(pady)), int(np.ceil(pady))
    pL, pr = int(np.floor(padx)), int(np.ceil(padx))
    # With k=4, s=1, d=1 the conv of the padded input already has the desired
    # spatial size, so no crop is needed (matches the PyTorch forward).
    assert (H + pt + pb) - K + 1 == desired_h
    assert (W + pL + pr) - K + 1 == desired_w

    WCin = W * Cin
    WCout = desired_w * Cout
    KWCin = K * WCin

    # ---- fused banded weights (built once, wrapper-side) -------------------
    # Wband[(ky, wcol, ci), (x, co)] = w[ky, kx, ci, co] with wcol = x+kx-pL;
    # entries with wcol outside [0, W) are dropped — that drop IS the
    # left/right 'same' zero padding.  Row order (ky-major, then wcol, then
    # ci) matches the im2row LHS layout below, so the whole conv becomes ONE
    # GEMM with contraction depth K*W*Cin = 256.
    sel = (jnp.arange(W)[:, None, None] ==
           jnp.arange(desired_w)[None, :, None]
           + jnp.arange(K)[None, None, :] - pL).astype(w_hwio.dtype)  # (W,Wo,K)
    wband = jnp.einsum('pxk,ykio->ypixo', sel, w_hwio)   # (K, W, Cin, Wo, Cout)
    wband = wband.reshape(KWCin, WCout).astype(jnp.bfloat16)
    # The banded matrix is O(W^2 * Cin * Cout) bf16 (64 KiB here).  Guard its
    # VMEM footprint before scaling W (v7x has only 64 MiB VMEM).
    assert wband.size * 2 <= 8 * 1024 * 1024, "tile the Wo axis for large W"
    # TODO(synk): for large W, add a grid axis over output-column tiles of
    # wband (or fall back to per-tap Cin-deep contraction) instead of keeping
    # the full banded matrix resident.

    b_row = jnp.tile(b.astype(jnp.float32), desired_w).reshape(1, WCout)

    # ---- activations: NCHW → row-padded NHWC → im2row over ky --------------
    # TODO(synk): keep activations NHWC end-to-end in a real model so the
    # NCHW→NHWC transpose here and the output NHWC→NCHW transpose below
    # (each a full HBM round trip in a separate XLA op) disappear.
    x_rows = jnp.transpose(x_nchw, (0, 2, 3, 1)).reshape(N, H, WCin)
    x_rows = jnp.pad(x_rows, ((0, 0), (pt, pb), (0, 0)))   # row halo only
    x_rows = x_rows.astype(jnp.bfloat16)
    # im2row over the K tap rows: each output row's LHS is the concatenation
    # of the K row-shifted input rows → (N*H, K*W*Cin), lane-dense (256).
    lhs = jnp.concatenate(
        [x_rows[:, ky:ky + desired_h, :] for ky in range(K)], axis=-1)
    lhs = lhs.reshape(N * desired_h, KWCin)

    # ---- batching: Nb images (= Nb*desired_h GEMM rows) per grid step ------
    # Target M ≈ 128 MXU rows, but keep ≥2 grid steps so both v7x TensorCores
    # get work on the "parallel" axis.
    # TODO(synk): if a v7x trace shows the batch axis not splitting across
    # TCs, switch dimension_semantics to pltpu.CORE_PARALLEL.
    nb_cap = max(1, 128 // desired_h)
    if N >= 2:
        nb_cap = min(nb_cap, N // 2)
    Nb = _largest_divisor_leq(N, nb_cap)
    num_steps = N // Nb
    M = Nb * desired_h

    def _kernel(x_ref, w_ref, b_ref, o_ref):
        # x_ref: (M, K*W*Cin)       bf16  im2row'd rows of Nb images
        # w_ref: (K*W*Cin, W*Cout)  bf16  fused banded weights (resident)
        # b_ref: (1, W*Cout)        f32
        # o_ref: (M, W*Cout)              lane-dense output
        acc = jnp.dot(x_ref[...], w_ref[...],
                      preferred_element_type=jnp.float32)   # one MXU GEMM
        acc = acc + b_ref[...]                 # f32 bias epilogue (v5e-safe)
        o_ref[...] = jnp.maximum(acc, 0.0).astype(o_ref.dtype)

    # Output dtype follows the input (f32 here).  If the downstream consumer
    # is bf16, emit bf16 instead to halve writeback bytes — the epilogue math
    # stays f32 either way.
    out_dtype = x_nchw.dtype

    out_flat = pl.pallas_call(
        _kernel,
        out_shape=jax.ShapeDtypeStruct((N * desired_h, WCout), out_dtype),
        grid_spec=pltpu.PrefetchScalarGridSpec(
            num_scalar_prefetch=0,
            grid=(num_steps,),
            in_specs=[
                pl.BlockSpec((M, KWCin), lambda n: (n, 0)),
                # Constant-index operands: single-buffered, no dead 2nd buffer.
                pl.BlockSpec((KWCin, WCout), lambda n: (0, 0),
                             pipeline_mode=pl.Buffered(1)),
                pl.BlockSpec((1, WCout), lambda n: (0, 0),
                             pipeline_mode=pl.Buffered(1)),
            ],
            out_specs=pl.BlockSpec((M, WCout), lambda n: (n, 0)),
        ),
        compiler_params=pltpu.CompilerParams(
            dimension_semantics=("parallel",),
            vmem_limit_bytes=32 * 1024 * 1024),
    )(lhs, wband, b_row)

    # TODO(synk): for large H, add a row-tile grid axis (≈512 output rows per
    # step where VMEM allows; smaller on v7x's 64 MiB VMEM) with a (K-1)-row
    # halo instead of batching whole images.

    # (N*H, W*Cout) → (N, Cout, H, W) to match the PyTorch convention.
    out = out_flat.reshape(N, desired_h, desired_w, Cout)
    return jnp.transpose(out, (0, 3, 1, 2))


def _reference(x_nchw, w_hwio, b):
    """Pure-JAX reference (PyTorch Conv2d + ReLU semantics), evaluated on the
    same bf16-rounded operands the kernel consumes."""
    xq = x_nchw.astype(jnp.bfloat16).astype(jnp.float32)
    wq = w_hwio.astype(jnp.bfloat16).astype(jnp.float32)
    w_oihw = jnp.transpose(wq, (3, 2, 0, 1))
    out = jax.lax.conv_general_dilated(
        xq, w_oihw, window_strides=(1, 1),
        padding=((1, 2), (1, 2)),
        dimension_numbers=("NCHW", "OIHW", "NCHW"),
        precision=jax.lax.Precision.HIGHEST)
    out = out + b.reshape(1, -1, 1, 1)
    return jnp.maximum(out, 0.0)


if __name__ == "__main__":
    key = jax.random.PRNGKey(0)
    k_x, k_w, k_b = jax.random.split(key, 3)

    N, Cin, H, W = 2, 4, 16, 16
    Cout, K = 8, 4

    x = jax.random.normal(k_x, (N, Cin, H, W), jnp.float32)
    # Deterministic synthetic parameters (HWIO layout).
    w = jax.random.normal(k_w, (K, K, Cin, Cout), jnp.float32) * 0.1
    b = jax.random.normal(k_b, (Cout,), jnp.float32) * 0.1

    out = jax.block_until_ready(conv_block_forward(x, w, b))
    ref = jax.block_until_ready(_reference(x, w, b))

    assert out.shape == (N, Cout, H, W), out.shape
    np.testing.assert_allclose(np.asarray(out), np.asarray(ref),
                               rtol=1e-3, atol=1e-3)
    print("KERNEL_OK")
</pallas_src>

<mosaic_0001>
module attributes {stable_mosaic.version = 11 : i64} {
  func.func @_kernel(%arg0: i32, %arg1: memref<16x256xbf16, #tpu.memory_space<vmem>>, %arg2: memref<256x128xbf16, #tpu.memory_space<vmem>>, %arg3: memref<1x128xf32, #tpu.memory_space<vmem>>, %arg4: memref<16x128xf32, #tpu.memory_space<vmem>>) attributes {dimension_semantics = [#tpu.dimension_semantics<parallel>], iteration_bounds = array<i64: 2>, scalar_prefetch = 0 : i64, scratch_operands = 0 : i64, tpu.core_type = #tpu.core_type<tc>, window_params = [{transform_indices = @transform_0, window_bounds = array<i64: 16, 256>}, {pipeline_mode = #tpu.pipeline_mode<synchronous>, transform_indices = @transform_1, window_bounds = array<i64: 256, 128>}, {pipeline_mode = #tpu.pipeline_mode<synchronous>, transform_indices = @transform_2, window_bounds = array<i64: 1, 128>}, {transform_indices = @transform_3, window_bounds = array<i64: 16, 128>}]} {
    %c0 = arith.constant 0 : index
    %c0_0 = arith.constant 0 : index
    %0 = vector.load %arg1[%c0, %c0_0] : memref<16x256xbf16, #tpu.memory_space<vmem>>, vector<16x256xbf16>
    %c0_1 = arith.constant 0 : index
    %c0_2 = arith.constant 0 : index
    %1 = vector.load %arg2[%c0_1, %c0_2] : memref<256x128xbf16, #tpu.memory_space<vmem>>, vector<256x128xbf16>
    %cst = arith.constant dense<0.000000e+00> : vector<16x128xf32>
    %2 = tpu.matmul %0, %1, %cst {dimension_numbers = #tpu.dot_dimension_numbers<[1], [0], [0], [1], [0, 0, 1, 1], [], []>} : vector<16x256xbf16>, vector<256x128xbf16>, vector<16x128xf32> -> vector<16x128xf32>
    %c0_3 = arith.constant 0 : index
    %c0_4 = arith.constant 0 : index
    %3 = vector.load %arg3[%c0_3, %c0_4] : memref<1x128xf32, #tpu.memory_space<vmem>>, vector<1x128xf32>
    %4 = vector.broadcast %3 : vector<1x128xf32> to vector<16x128xf32>
    %5 = arith.addf %2, %4 : vector<16x128xf32>
    %cst_5 = arith.constant 0.000000e+00 : f32
    %6 = vector.broadcast %cst_5 : f32 to vector<16x128xf32>
    %7 = arith.maximumf %5, %6 : vector<16x128xf32>
    %c0_6 = arith.constant 0 : index
    %c0_7 = arith.constant 0 : index
    %8 = vector.load %arg4[%c0_6, %c0_7] : memref<16x128xf32, #tpu.memory_space<vmem>>, vector<16x128xf32>
    tpu.vector_store %arg4[%c0_6, %c0_7], %7 {strides = array<i32>} : memref<16x128xf32, #tpu.memory_space<vmem>>, vector<16x128xf32>,
    return
  }
  func.func @transform_0(%arg0: i32) -> (i32, i32) {
    %c0_i32 = arith.constant 0 : i32
    %c0_i32_0 = arith.constant 0 : i32
    return %arg0, %c0_i32 : i32, i32
  }
  func.func @transform_1(%arg0: i32) -> (i32, i32) {
    %c0_i32 = arith.constant 0 : i32
    %c0_i32_0 = arith.constant 0 : i32
    %c0_i32_1 = arith.constant 0 : i32
    return %c0_i32, %c0_i32_0 : i32, i32
  }
  func.func @transform_2(%arg0: i32) -> (i32, i32) {
    %c0_i32 = arith.constant 0 : i32
    %c0_i32_0 = arith.constant 0 : i32
    %c0_i32_1 = arith.constant 0 : i32
    return %c0_i32, %c0_i32_0 : i32, i32
  }
  func.func @transform_3(%arg0: i32) -> (i32, i32) {
    %c0_i32 = arith.constant 0 : i32
    %c0_i32_0 = arith.constant 0 : i32
    return %arg0, %c0_i32 : i32, i32
  }
}

</mosaic_0001>

<bundles_post_ra>
// kernel: tpu_custom_call.1
= control target key start
LH: loop header
LB: loop body
LE: loop exit
PB: predicated region body
PF: predicated region fallthrough
CT: control target
= control target key end

     0   :  { %8 = vsyncpa [#allocation3], 0  ;;  %s1011_s0 = inlined_call_operand.hbm [shape: bf16[32,256], index: 0, kind: input, shape index: {}]   ;;  %s1012_s1 = inlined_call_operand.hbm [shape: bf16[256,128], index: 1, kind: input, shape index: {}]   ;;  %s1013_s2 = inlined_call_operand.vmem [shape: f32[1,128], index: 2, kind: input, shape index: {}]   ;;  %s1014_s3 = inlined_call_operand.hbm [shape: f32[32,128], index: 3, kind: output, shape index: {}]  }
   0x1   :  { %10 = vsyncpa [#allocation3 + $0x1], 0 }
   0x2   :  { %11 = vsyncpa [#allocation6], 0 }
   0x3   :  { %12 = vsyncpa [#allocation4], 0 }
   0x4   :  { %14 = vsyncpa [#allocation4 + $0x1], 0  ;;  %s799_s12 = smov 0   ;;  %s801_s13 = smov 0  }
   0x5   :  { %s803_s14 = smov 0   ;;  %s805_s15 = smov 0  }
   0x6 LB: > { %s820_s16 = sadd.s32 4294967295, %s768_s15   ;;  %s497_s17 = sadd.s32 4294967294, %s768_s15   ;;  %s768_s15 = sphi %s805_s15, %s1034_s15   ;;  %s764_s14 = sphi %s803_s14, %s1033_s14   ;;  %s760_s13 = sphi %s801_s13, %s1032_s13   ;;  %s756_s12 = sphi %s799_s12, %s1031_s12  }
   0x7   : > { %p40_p0 = scmp.ne.s32.totalorder %s760_s13, %s756_s12  ;;  %p1015_p1 = scmp.eq.s32.totalorder %s820_s16, 0 }
   0x8   : > { %p112_p3 = scmp.eq.s32.totalorder %s497_s17, 1  ;;  %p498_p5 = scmp.ge.s32.totalorder %s768_s15, 1 }
   0x9   : > { %p829_p4 = por %p1015_p1, %p40_p0  ;;  %p119_p7 = scmp.lt.s32.totalorder %s768_s15, 3 }
   0xa   : > { %p834_p6 = por %p112_p3, %p40_p0  ;;  %s770_s21 = smov [#allocation5]  }
   0xb   : > { %s1018_s18 = scalar_select %p829_p4, 1, 0 }
   0xc   : > { %s1019_s19 = scalar_select %p834_p6, 1, 0 }
   0xd   : > { %p839_p8 = pnand %p498_p5, %p119_p7  ;;  %s131_s22 = sshll.u32 %s770_s21, 4  ;;  %s843_s22 = int_to_ptr.vmem [resolvable:$true] %s131_s22 }
   0xe   : > { %s855_s24 = sadd.s32 1, %s768_s15   ;;  %s27_s25 = sadd.s32 1, %s764_s14 }
   0xf   : > { %s1020_s20 = scalar_select %p839_p8, 1, 0 }
  0x10   : > { %p566_p9 = pneg %p839_p8  ;;  %s24_s26 = ssub.s32 %s768_s15, %s855_s24 }
  0x11   : > { %s640_s29 = scalar_lea.hbm %s1012_s1, 2048 }
  0x12   : > { %p850_p11 = pnand %p566_p9, %p1015_p1  ;;  %p641_p12 = scmp.ne.s32.totalorder %s1012_s1, %s640_s29 }
  0x13   : > { %p647_p5 = scmp.lt.u32.totalorder %s640_s29, %s1012_s1 }
  0x14   : > { %p642_p13 = pneg %p850_p11 }
  0x16   : > { %p643_p0 = pnand %p642_p13, %p641_p12 }
  0x18   : > { %p644_p3 = pneg %p643_p0 }
  0x1a   : > { %p649_p7 = pnand %p647_p5, %p644_p3 }
  0x1c   : > { %652 = shalt.err (!%p649_p7)
}
  0x1d   : > { %s653_s7 = scalar_lea.vmem %s843_s22, 2048  ;;  %p661_p2 = scmp.lt.s32.totalorder %s843_s22, %s843_s22 }
  0x1e   : > { %p654_p9 = scmp.ne.s32.totalorder %s843_s22, %s653_s7  ;;  %p662_p6 = scmp.lt.s32.totalorder %s653_s7, %s653_s7 }
  0x20   : > { %p656_p10 = pnand %p654_p9, %p642_p13  ;;  %p663_p4 = por %p662_p6, %p661_p2 }
  0x22   : > { %p657_p1 = pneg %p656_p10 }
  0x24   : > { %p664_p8 = pnand %p663_p4, %p657_p1 }
  0x26   : > { %667 = shalt.err (!%p664_p8)
}
  0x27   : > { %s771_s8 = smov 64   ;;  %s772_s9 = smov 4  }
  0x28   : > { %569 = dma.hbm_to_vmem [thread:$0]  (!%p850_p11), %s1012_s1, 2048, %s843_s22, [#allocation6], %s771_s8, %s771_s8, %s772_s9  }
  0x29   : > { %p25_p2 = scmp.eq.s32.totalorder %s24_s26, 0  ;;  %p34_p1 = scmp.ne.s32.totalorder %s764_s14, %s760_s13 }
  0x2a   : > { %p35_p4 = scmp.eq.s32.totalorder %s768_s15, 0  ;;  %p579_p6 = scmp.lt.s32.totalorder %s768_s15, 2 }
  0x2b   : > { %s886_s17 = scalar_select %p25_p2, %s764_s14, %s27_s25  }
  0x2c   : > { %p36_p8 = por %p35_p4, %p34_p1  ;;  %p1022_p10 = scmp.eq.s32.totalorder %s820_s16, 1 }
  0x2d   : > { %s148_s27 = sand.u32 1, %s764_s14   ;;  %s534_s28 = sshll.u32 %s768_s15, 8 }
  0x2e   : > { %p890_p12 = por %p1022_p10, %p34_p1  ;;  %s501_s29 = sshll.u32 %s148_s27, 4 }
  0x2f   : > { %s899_s4 = scalar_lea.hbm %s1011_s0, %s534_s28  ;;  %s152_s22 = scalar_lea.vmem [#allocation2], %s501_s29 }
  0x30   : > { %s160_s25 = sshll.u32 %s152_s22, 4  ;;  %p901_p11 = pnand %p579_p6, %p36_p8  ;;  %s905_s25 = int_to_ptr.vmem [resolvable:$true] %s160_s25 }
  0x31   : > { %s907_s5 = scalar_lea.sflag [#allocation3], %s148_s27  ;;  %s668_s6 = scalar_lea.hbm %s899_s4, 256 }
  0x32   : > { %p669_p13 = scmp.ne.s32.totalorder %s899_s4, %s668_s6  ;;  %p670_p0 = pneg %p901_p11 }
  0x33   : > { %s673_s9 = scalar_lea.hbm %s1011_s0, 512  ;;  %p674_p7 = scmp.lt.u32.totalorder %s899_s4, %s1011_s0 }
  0x34   : > { %p671_p3 = pnand %p670_p0, %p669_p13  ;;  %p675_p9 = scmp.lt.u32.totalorder %s673_s9, %s668_s6 }
  0x35   : > { %p677_p1 = scmp.lt.u32.totalorder %s668_s6, %s899_s4 }
  0x36   : > { %p672_p5 = pneg %p671_p3  ;;  %p676_p2 = por %p675_p9, %p674_p7 }
  0x38   : > { %p678_p4 = por %p677_p1, %p676_p2 }
  0x3a   : > { %p679_p6 = pnand %p678_p4, %p672_p5 }
  0x3c   : > { %682 = shalt.err (!%p679_p6)
}
  0x3d   : > { %s683_s27 = scalar_lea.vmem %s905_s25, 256  ;;  %s773_s28 = smov [#allocation2]  }
  0x3e   : > { %p684_p8 = scmp.ne.s32.totalorder %s905_s25, %s683_s27  ;;  %s688_s29 = sshll.u32 %s773_s28, 4  ;;  %s689_s29 = int_to_ptr.vmem [resolvable:$false] %s688_s29 }
  0x3f   : > { %s690_s23 = scalar_lea.vmem %s689_s29, 512  ;;  %p691_p3 = scmp.lt.s32.totalorder %s905_s25, %s689_s29 }
  0x40   : > { %p686_p10 = pnand %p684_p8, %p670_p0  ;;  %p692_p7 = scmp.lt.s32.totalorder %s690_s23, %s683_s27 }
  0x42   : > { %p687_p13 = pneg %p686_p10  ;;  %p693_p9 = por %p692_p7, %p691_p3 }
  0x44   : > { %p694_p2 = pnand %p693_p9, %p687_p13 }
  0x46   : > { %697 = shalt.err (!%p694_p2)
}
  0x47   : > { %s774_s30 = smov 128   ;;  %s775_s22 = smov 8  }
  0x48   : > { %573 = dma.hbm_to_vmem [thread:$0]  (!%p901_p11), %s899_s4, 256, %s905_s25, %s907_s5, %s774_s30, %s774_s30, %s775_s22  }
  0x49   : > { %p1025_p0 = scmp.ne.s32.totalorder %s1020_s20, 0 }
  0x4a   : > { %s938_s6 = sand.u32 (!%p1025_p0), 1, %s760_s13   ;;  %p1026_p5 = scmp.ne.s32.totalorder (!%p1025_p0), %s1018_s18, 0 }
  0x4b   : > { %172 = sbr.rel (%p1025_p0) target bundleno = 355 (0x163), region = 32  ;;  %s506_s7 = sshll.u32 (!%p1025_p0), %s938_s6, 4 }
  0x4c   : > { %s175_s8 = scalar_lea.sflag (!%p1025_p0), [#allocation3], %s938_s6  ;;  %s944_s9 = scalar_lea.vmem (!%p1025_p0), [#allocation2], %s506_s7 }
  0x52   : > { %743 = dma.done.wait (%p1026_p5), %s175_s8, 256  }
  0x53   : > { %745 = vsyncadd (%p1026_p5), %s175_s8, 4294967040  ;;  %p1027_p11 = scmp.eq.s32.totalorder %s820_s16, 0 }
  0x55   : > { %747 = dma.done.wait (%p1027_p11), [#allocation6], 2048   ;;  %p1028_p1 = pmov %p1027_p11 }
  0x56   : > { %v621_v0 = vld [vmem:[#allocation5 + $0x40] sm:$0xff]   ;;  %v623_v2 = vld [vmem:[#allocation5 + $0x48] sm:$0xff]   ;;  %v625_v4 = vld [vmem:[#allocation5 + $0x50] sm:$0xff]   ;;  %s204_s4 = scalar_lea.vmem [#allocation7], %s506_s7  ;;  %s535_s26 = sshll.u32 %s820_s16, 8 }
  0x57   : > { %749 = vsyncadd (%p1028_p1), [#allocation6], 4294965248  ;;  %v622_v1 = vld [vmem:[#allocation5] sm:$0xff]   ;;  %536 = vmatprep.subr.bf16.mxu0 %v621_v0  ;;  %v624_v3 = vld [vmem:[#allocation5 + $0x8] sm:$0xff]   ;;  %s414_s25 = sshll.u32 %s204_s4, 4  ;;  %s967_s11 = scalar_lea.hbm %s1014_s3, %s535_s26  ;;  %s962_s25 = int_to_ptr.vmem [resolvable:$true] %s414_s25 }
  0x58   : > { %537 = vmatpush3.bf16.msra.mxu0 %v622_v1  ;;  %v626_v5 = vld [vmem:[#allocation5 + $0x10] sm:$0xff]   ;;  %v627_v6 = vld [vmem:[#allocation5 + $0x58] sm:$0xff]   ;;  %v629_v8 = vld [vmem:[#allocation5 + $0x60] sm:$0xff]   ;;  %s401_s27 = scalar_lea.sflag [#allocation4], %s938_s6  ;;  %s698_s28 = scalar_lea.vmem %s962_s25, 256 }
  0x59   : > { %538 = vmatprep.subr.bf16.mxu0 %v623_v2  ;;  %v628_v7 = vld [vmem:[#allocation5 + $0x18] sm:$0xff]   ;;  %v630_v9 = vld [vmem:[#allocation5 + $0x20] sm:$0xff]   ;;  %v631_v10 = vld [vmem:[#allocation5 + $0x68] sm:$0xff]   ;;  %p699_p4 = scmp.ne.s32.totalorder %s962_s25, %s698_s28  ;;  %s776_s16 = smov [#allocation7]  }
  0x5a   : > { %v639_v11 = vld [vmem:[%s944_s9 + $0x4] ss:$8 sps:$4 sm:$0xff]   ;;  %v637_v17 = vld [vmem:[%s944_s9] ss:$8 sps:$4 sm:$0xff]   ;;  %s702_s29 = sshll.u32 %s776_s16, 4  ;;  %s703_s29 = int_to_ptr.vmem [resolvable:$false] %s702_s29 }
  0x5b   : > { %v632_v12 = vld [vmem:[#allocation5 + $0x28] sm:$0xff]   ;;  %387 = vmatprep.mubr.bf16.mxu0 %v639_v11  ;;  %v633_v13 = vld [vmem:[#allocation5 + $0x70] sm:$0xff]   ;;  %v635_v15 = vld [vmem:[#allocation5 + $0x78] sm:$0xff]   ;;  %p700_p6 = pnand %p699_p4, %p890_p12  ;;  %s704_s23 = scalar_lea.vmem %s703_s29, 512 }
  0x5c   : > { %539 = vmatpush3.bf16.msra.mxu0 %v624_v3  ;;  %v634_v14 = vld [vmem:[#allocation5 + $0x30] sm:$0xff]   ;;  %v636_v16 = vld [vmem:[#allocation5 + $0x38] sm:$0xff]   ;;  %v509_v19 = vld [vmem:[%s1013_s2] ss:$0 sm:$0xff]  ;;  %p705_p10 = scmp.lt.s32.totalorder %s962_s25, %s703_s29  ;;  %p706_p13 = scmp.lt.s32.totalorder %s704_s23, %s698_s28 }
  0x5d   : > { %540 = vmatprep.subr.bf16.mxu0 %v625_v4  ;;  %p701_p8 = pneg %p700_p6 }
  0x5e   : > { %p707_p3 = por %p706_p13, %p705_p10 }
  0x60   : > { %541 = vmatpush3.bf16.msra.mxu0 %v626_v5  ;;  %p708_p7 = pnand %p707_p3, %p701_p8 }
  0x61   : > { %542 = vmatprep.subr.bf16.mxu0 %v627_v6 }
  0x64   : > { %543 = vmatpush3.bf16.msra.mxu0 %v628_v7 }
  0x65   : > { %544 = vmatprep.subr.bf16.mxu0 %v629_v8 }
  0x68   : > { %545 = vmatpush3.bf16.msra.mxu0 %v630_v9 }
  0x69   : > { %546 = vmatprep.subr.bf16.mxu0 %v631_v10 }
  0x6c   : > { %547 = vmatpush3.bf16.msra.mxu0 %v632_v12 }
  0x6d   : > { %548 = vmatprep.subr.bf16.mxu0 %v633_v13 }
  0x70   : > { %549 = vmatpush3.bf16.msra.mxu0 %v634_v14 }
  0x71   : > { %550 = vmatprep.subr.bf16.mxu0 %v635_v15 }
  0x74   : > { %551 = vmatpush3.bf16.msra.mxu0 %v636_v16 }
  0x77   : > { %388 = vmatmul.mubr.bf16.vlgmr.msra.gmra.mrb[0].mxu0 %v637_v17 }
 0x14a   : > { %v552_v18 = vpop.f32.mrb[0].mxu0 }
 0x14b   : > { %v553_v20 = vpop.f32.mrb[1].mxu0 }
 0x14c   : > { %v554_v21 = vadd.f32 %v553_v20, %v552_v18  ;;  %v555_v22 = vpop.f32.mrb[2].mxu0 }
 0x14d   : > { %v556_v23 = vpop.f32.mrb[3].mxu0 }
 0x14e   : > { %v390_v24 = vadd.f32 %v554_v21, %v509_v19  ;;  %v557_v25 = vadd.f32 %v556_v23, %v555_v22 }
 0x150   : > { %v396_v26 = vmax.f32 %v390_v24, 0.0  ;;  %v393_v27 = vadd.f32 %v557_v25, %v509_v19 }
 0x152   : > { %398 = vst [vmem:[%s204_s4] sm:$0xff] %v396_v26  ;;  %v397_v28 = vmax.f32 %v393_v27, 0.0 }
 0x154   : > { %399 = vst [vmem:[%s204_s4 + $0x8] sm:$0xff] %v397_v28 }
 0x155   : > { %711 = shalt.err (!%p708_p7)
}
 0x156   : > { %s712_s30 = scalar_lea.hbm %s967_s11, 256  ;;  %s716_s8 = scalar_lea.hbm %s1014_s3, 512 }
 0x157   : > { %p713_p9 = scmp.ne.s32.totalorder %s967_s11, %s712_s30  ;;  %p717_p5 = scmp.lt.u32.totalorder %s967_s11, %s1014_s3 }
 0x158   : > { %p718_p11 = scmp.lt.u32.totalorder %s716_s8, %s712_s30  ;;  %p720_p4 = scmp.lt.u32.totalorder %s712_s30, %s967_s11 }
 0x159   : > { %p714_p2 = pnand %p713_p9, %p890_p12 }
 0x15a   : > { %p719_p1 = por %p718_p11, %p717_p5 }
 0x15b   : > { %p715_p0 = pneg %p714_p2 }
 0x15c   : > { %p721_p6 = por %p720_p4, %p719_p1 }
 0x15e   : > { %p722_p8 = pnand %p721_p6, %p715_p0 }
 0x160   : > { %725 = shalt.err (!%p722_p8)
}
 0x161   : > { %s777_s20 = smov 128   ;;  %s778_s4 = smov 8  }
 0x162   : > { %564 = dma.vmem_to_hbm [thread:$0]  (%p890_p12), %s962_s25, 256, %s967_s11, %s401_s27, %s777_s20, %s777_s20, %s778_s4  }
 0x163 PF: > { %s429_s26 = sand.u32 1, %s756_s12   ;;  %p1029_p10 = scmp.ne.s32.totalorder %s1019_s19, 0 }
 0x164   : > { %p1030_p13 = scmp.ge.s32.totalorder %s768_s15, 2  ;;  %s430_s5 = scalar_lea.sflag [#allocation4], %s429_s26 }
 0x166   : > { %p575_p3 = pnand %p1030_p13, %p1029_p10 }
 0x168   : > { %751 = dma.done.wait (!%p575_p3), %s430_s5, 256  }
 0x169   : > { %753 = vsyncadd (!%p575_p3), %s430_s5, 4294967040  ;;  %p17_p7 = scmp.ge.s32.totalorder %s855_s24, 4   ;;  %s1031_s12 = smov %s760_s13 }
 0x16a   : > { %s1032_s13 = smov %s764_s14  ;;  %s1033_s14 = smov %s886_s17 }
 0x16b   : > { %s1034_s15 = smov %s855_s24  ;;  %19 = sbr.rel (!%p17_p7) target bundleno = 6 (0x6), region = 81 }
 0x172   :  { %435 = vsyncpa [#allocation3], 1 }
 0x173   :  { %437 = vsyncpa [#allocation3 + $0x1], 1 }
 0x174   :  { %438 = vsyncpa [#allocation6], 1 }
 0x175   :  { %439 = vsyncpa [#allocation4], 1 }
 0x176   :  { %441 = vsyncpa [#allocation4 + $0x1], 1 }

</bundles_post_ra>
